<compile_context>
chip_gen: v7x
topology: tpu7x:2x2x1
jax: 0.10.0
libtpu: 0.0.40
codegen_flags: <defaults>
</compile_context>

<pallas_src>
import functools
import math

import jax
import jax.numpy as jnp
from jax.experimental import pallas as pl
from jax.experimental.pallas import tpu as pltpu


def _round_up(x, m):
    return ((x + m - 1) // m) * m


# ---------------------------------------------------------------------------
# Path 1: whole-network fused kernel (activations stay resident in VMEM).
# ---------------------------------------------------------------------------

def _make_fused_mlp_kernel(n_layers, compute_dtype):
    def kernel(*refs):
        x_ref = refs[0]
        o_ref = refs[-1]
        h = x_ref[...]
        for layer in range(n_layers):
            w = refs[1 + 2 * layer][...]
            b = refs[2 + 2 * layer][...]
            if compute_dtype is not None:
                h = h.astype(compute_dtype)
                w = w.astype(compute_dtype)
            h = jnp.tanh(
                jnp.dot(h, w, preferred_element_type=jnp.float32)
                + b.astype(jnp.float32)
            )
        o_ref[...] = h.astype(o_ref.dtype)

    return kernel


def _fused_vmem_bytes(tm, dims, itemsize=4):
    """Rough (8,128)-padded VMEM footprint of the fully fused MLP kernel."""

    def padded(r, c):
        return _round_up(max(r, 1), 8) * _round_up(max(c, 1), 128) * itemsize

    total = 2 * padded(tm, dims[0])            # x tile (double buffered)
    total += 2 * padded(tm, dims[-1])          # output tile (double buffered)
    for k, n in zip(dims[:-1], dims[1:]):
        total += 2 * (padded(k, n) + padded(1, n))   # weight + bias
    for d in dims[1:-1]:
        total += padded(tm, d)                 # intermediate activation (resident)
    return total


_FUSED_VMEM_BUDGET = 24 * 1024 * 1024   # conservative across v5e / v6e / v7x
_FUSED_VMEM_LIMIT = 32 * 1024 * 1024


def mlp_forward_fused(x, params, *, tile_m=512, compute_dtype=None):
    """tanh(...tanh(x @ W0 + b0)... @ Wn + bn) in a single pallas_call."""
    M, K = x.shape
    dims = [K] + [w.shape[1] for w, _ in params]
    tm = tile_m if M > tile_m else M
    n_layers = len(params)

    in_specs = [pl.BlockSpec((tm, dims[0]), lambda i: (i, 0))]
    inputs = [x]
    for (w, b), (k, n) in zip(params, zip(dims[:-1], dims[1:])):
        in_specs.append(pl.BlockSpec((k, n), lambda i: (0, 0)))   # full weight
        in_specs.append(pl.BlockSpec((1, n), lambda i: (0, 0)))   # full bias row
        inputs.append(w)
        inputs.append(b.reshape(1, n))

    return pl.pallas_call(
        _make_fused_mlp_kernel(n_layers, compute_dtype),
        out_shape=jax.ShapeDtypeStruct((M, dims[-1]), x.dtype),
        grid_spec=pltpu.PrefetchScalarGridSpec(
            num_scalar_prefetch=0,
            grid=(pl.cdiv(M, tm),),
            in_specs=in_specs,
            out_specs=pl.BlockSpec((tm, dims[-1]), lambda i: (i, 0)),
        ),
        compiler_params=pltpu.CompilerParams(
            dimension_semantics=("parallel",),
            vmem_limit_bytes=_FUSED_VMEM_LIMIT,
        ),
    )(*inputs)


# ---------------------------------------------------------------------------
# Path 2: per-layer fused Linear+Tanh kernel (for MLPs too large to fuse).
# ---------------------------------------------------------------------------

def _linear_tanh_kernel_single(x_ref, w_ref, b_ref, o_ref, *, compute_dtype):
    """K fits in one block: no accumulator scratch, no K grid axis."""
    x = x_ref[...]
    w = w_ref[...]
    if compute_dtype is not None:
        x = x.astype(compute_dtype)
        w = w.astype(compute_dtype)
    acc = jnp.dot(x, w, preferred_element_type=jnp.float32)
    o_ref[...] = jnp.tanh(acc + b_ref[...].astype(jnp.float32)).astype(o_ref.dtype)


def _linear_tanh_kernel_tiled(x_ref, w_ref, b_ref, o_ref, acc_ref,
                              *, k_total, tk, compute_dtype):
    """K tiled over grid axis 2; ragged K tail masked in-kernel."""
    k = pl.program_id(2)

    @pl.when(k == 0)
    def _():
        acc_ref[...] = jnp.zeros_like(acc_ref)

    x = x_ref[...]
    w = w_ref[...]
    rem = k_total % tk
    if rem != 0:
        # Last K block reads past the array end (garbage): zero both the
        # out-of-range x columns and w rows so the MXU contribution is exact.
        valid = jnp.where(k == pl.num_programs(2) - 1, rem, tk)
        col = jax.lax.broadcasted_iota(jnp.int32, x.shape, 1)
        row = jax.lax.broadcasted_iota(jnp.int32, w.shape, 0)
        x = jnp.where(col < valid, x, jnp.zeros_like(x))
        w = jnp.where(row < valid, w, jnp.zeros_like(w))
    if compute_dtype is not None:
        x = x.astype(compute_dtype)
        w = w.astype(compute_dtype)
    acc_ref[...] += jnp.dot(x, w, preferred_element_type=jnp.float32)

    @pl.when(k == pl.num_programs(2) - 1)
    def _():
        o_ref[...] = jnp.tanh(
            acc_ref[...] + b_ref[...].astype(jnp.float32)
        ).astype(o_ref.dtype)


def linear_tanh(x, w, b, *, tile_m=512, tile_n=512, tile_k=512,
                compute_dtype=None, vmem_limit_bytes=None):
    """y = tanh(x @ w + b) as one fused Pallas kernel.  x:(M,K), w:(K,N), b:(N,)."""
    M, K = x.shape
    Kw, N = w.shape
    assert Kw == K and b.shape == (N,)

    # Full-dim blocks for small dims (exempt from the (8,128) rule); otherwise
    # large lane/sublane-aligned tiles (512 is a multiple of both 8 and 128).
    tm = tile_m if M > tile_m else M
    tn = tile_n if N > tile_n else N
    tk = tile_k if K > tile_k else K

    b2d = b.reshape(1, N)

    if tk == K:
        # Fast path: contraction fits in one block.
        return pl.pallas_call(
            functools.partial(_linear_tanh_kernel_single,
                              compute_dtype=compute_dtype),
            out_shape=jax.ShapeDtypeStruct((M, N), x.dtype),
            grid_spec=pltpu.PrefetchScalarGridSpec(
                num_scalar_prefetch=0,
                grid=(pl.cdiv(M, tm), pl.cdiv(N, tn)),
                in_specs=[
                    pl.BlockSpec((tm, tk), lambda i, j: (i, 0)),
                    pl.BlockSpec((tk, tn), lambda i, j: (0, j)),
                    pl.BlockSpec((1, tn), lambda i, j: (0, j)),
                ],
                out_specs=pl.BlockSpec((tm, tn), lambda i, j: (i, j)),
            ),
            compiler_params=pltpu.CompilerParams(
                dimension_semantics=("parallel", "parallel"),
                vmem_limit_bytes=vmem_limit_bytes,
            ),
        )(x, w, b2d)

    # General path: K reduced over the last (arbitrary) grid axis with an f32
    # VMEM accumulator; bias + tanh fused into the last-K epilogue.
    return pl.pallas_call(
        functools.partial(_linear_tanh_kernel_tiled,
                          k_total=K, tk=tk, compute_dtype=compute_dtype),
        out_shape=jax.ShapeDtypeStruct((M, N), x.dtype),
        grid_spec=pltpu.PrefetchScalarGridSpec(
            num_scalar_prefetch=0,
            grid=(pl.cdiv(M, tm), pl.cdiv(N, tn), pl.cdiv(K, tk)),
            in_specs=[
                pl.BlockSpec((tm, tk), lambda i, j, k: (i, k)),
                pl.BlockSpec((tk, tn), lambda i, j, k: (k, j)),
                pl.BlockSpec((1, tn), lambda i, j, k: (0, j)),
            ],
            out_specs=pl.BlockSpec((tm, tn), lambda i, j, k: (i, j)),
            scratch_shapes=[pltpu.VMEM((tm, tn), jnp.float32)],
        ),
        compiler_params=pltpu.CompilerParams(
            dimension_semantics=("parallel", "parallel", "arbitrary"),
            vmem_limit_bytes=vmem_limit_bytes,
        ),
    )(x, w, b2d)


# ---------------------------------------------------------------------------
# MLPWrapper forward.
# ---------------------------------------------------------------------------

def mlp_forward(x, params, *, compute_dtype=None):
    """Forward pass of MLPWrapper: tanh(Linear(...)) for every layer."""
    orig_shape = x.shape
    if x.ndim != 2:
        x = x.reshape(-1, orig_shape[-1])
    M = x.shape[0]
    dims = [x.shape[1]] + [w.shape[1] for w, _ in params]
    tm = 512 if M > 512 else M

    if _fused_vmem_bytes(tm, dims) <= _FUSED_VMEM_BUDGET:
        out = mlp_forward_fused(x, params, tile_m=512, compute_dtype=compute_dtype)
    else:
        h = x
        for w, b in params:
            h = linear_tanh(h, w, b, compute_dtype=compute_dtype)
        out = h

    if len(orig_shape) != 2:
        out = out.reshape(*orig_shape[:-1], dims[-1])
    return out


def mlp_reference(x, params):
    h = x
    for w, b in params:
        h = jnp.tanh(jnp.dot(h, w) + b)
    return h


def init_params(key, in_features, hidden_dim_list, out_features):
    """PyTorch nn.Linear-style init: U(-1/sqrt(fan_in), 1/sqrt(fan_in))."""
    dims = [in_features] + list(hidden_dim_list) + [out_features]
    params = []
    for fan_in, fan_out in zip(dims[:-1], dims[1:]):
        key, kw, kb = jax.random.split(key, 3)
        bound = 1.0 / math.sqrt(fan_in)
        w = jax.random.uniform(kw, (fan_in, fan_out), jnp.float32, -bound, bound)
        b = jax.random.uniform(kb, (fan_out,), jnp.float32, -bound, bound)
        params.append((w, b))
    return params, key


if __name__ == "__main__":
    key = jax.random.PRNGKey(0)

    # MLPWrapper(in_features=32, hidden_dim_list=[64, 32], out_features=16)
    batch = 8
    in_features = 32
    hidden_dim_list = [64, 32]
    out_features = 16

    params, key = init_params(key, in_features, hidden_dim_list, out_features)
    key, kx = jax.random.split(key)
    x = jax.random.normal(kx, (batch, in_features), dtype=jnp.float32)

    # Whole-network fused path (single pallas_call).
    y = jax.block_until_ready(mlp_forward(x, params))
    y_ref = mlp_reference(x, params)
    assert y.shape == (batch, out_features) and y.dtype == x.dtype
    max_err = float(jnp.max(jnp.abs(y - y_ref)))
    assert jnp.allclose(y, y_ref, rtol=1e-2, atol=1e-2), max_err

    # Also exercise the per-layer fallback kernels:
    #  - single-K-block fast path (no accumulator scratch),
    #  - K-tiled path with ragged-tail masking (640 = 2*256 + 128).
    key, kw2, kb2, kx2 = jax.random.split(key, 4)
    M2, K2, N2 = 128, 640, 256
    w2 = jax.random.normal(kw2, (K2, N2), jnp.float32) * 0.05
    b2 = jax.random.normal(kb2, (N2,), jnp.float32) * 0.05
    x2 = jax.random.normal(kx2, (M2, K2), jnp.float32)
    ref2 = jnp.tanh(jnp.dot(x2, w2) + b2)

    y_single = jax.block_until_ready(linear_tanh(x2, w2, b2, tile_k=1024))
    y_tiled = jax.block_until_ready(linear_tanh(x2, w2, b2, tile_k=256))
    assert jnp.allclose(y_single, ref2, rtol=1e-2, atol=1e-2)
    assert jnp.allclose(y_tiled, ref2, rtol=1e-2, atol=1e-2)

    print("KERNEL_OK")
</pallas_src>

<mosaic_0001>
module attributes {stable_mosaic.version = 11 : i64} {
  func.func @kernel(%arg0: i32, %arg1: memref<8x32xf32, #tpu.memory_space<vmem>>, %arg2: memref<32x64xf32, #tpu.memory_space<vmem>>, %arg3: memref<1x64xf32, #tpu.memory_space<vmem>>, %arg4: memref<64x32xf32, #tpu.memory_space<vmem>>, %arg5: memref<1x32xf32, #tpu.memory_space<vmem>>, %arg6: memref<32x16xf32, #tpu.memory_space<vmem>>, %arg7: memref<1x16xf32, #tpu.memory_space<vmem>>, %arg8: memref<8x16xf32, #tpu.memory_space<vmem>>) attributes {dimension_semantics = [#tpu.dimension_semantics<parallel>], iteration_bounds = array<i64: 1>, scalar_prefetch = 0 : i64, scratch_operands = 0 : i64, tpu.core_type = #tpu.core_type<tc>, window_params = [{transform_indices = @transform_0, window_bounds = array<i64: 8, 32>}, {pipeline_mode = #tpu.pipeline_mode<synchronous>, transform_indices = @transform_1, window_bounds = array<i64: 32, 64>}, {pipeline_mode = #tpu.pipeline_mode<synchronous>, transform_indices = @transform_2, window_bounds = array<i64: 1, 64>}, {pipeline_mode = #tpu.pipeline_mode<synchronous>, transform_indices = @transform_3, window_bounds = array<i64: 64, 32>}, {pipeline_mode = #tpu.pipeline_mode<synchronous>, transform_indices = @transform_4, window_bounds = array<i64: 1, 32>}, {pipeline_mode = #tpu.pipeline_mode<synchronous>, transform_indices = @transform_5, window_bounds = array<i64: 32, 16>}, {pipeline_mode = #tpu.pipeline_mode<synchronous>, transform_indices = @transform_6, window_bounds = array<i64: 1, 16>}, {transform_indices = @transform_7, window_bounds = array<i64: 8, 16>}]} {
    %c0 = arith.constant 0 : index
    %c0_0 = arith.constant 0 : index
    %0 = vector.load %arg1[%c0, %c0_0] : memref<8x32xf32, #tpu.memory_space<vmem>>, vector<8x32xf32>
    %c0_1 = arith.constant 0 : index
    %c0_2 = arith.constant 0 : index
    %1 = vector.load %arg2[%c0_1, %c0_2] : memref<32x64xf32, #tpu.memory_space<vmem>>, vector<32x64xf32>
    %c0_3 = arith.constant 0 : index
    %c0_4 = arith.constant 0 : index
    %2 = vector.load %arg3[%c0_3, %c0_4] : memref<1x64xf32, #tpu.memory_space<vmem>>, vector<1x64xf32>
    %cst = arith.constant dense<0.000000e+00> : vector<8x64xf32>
    %3 = tpu.matmul %0, %1, %cst {dimension_numbers = #tpu.dot_dimension_numbers<[1], [0], [0], [1], [0, 0, 1, 1], [], []>} : vector<8x32xf32>, vector<32x64xf32>, vector<8x64xf32> -> vector<8x64xf32>
    %4 = vector.broadcast %2 : vector<1x64xf32> to vector<8x64xf32>
    %5 = arith.addf %3, %4 : vector<8x64xf32>
    %6 = math.tanh %5 : vector<8x64xf32>
    %c0_5 = arith.constant 0 : index
    %c0_6 = arith.constant 0 : index
    %7 = vector.load %arg4[%c0_5, %c0_6] : memref<64x32xf32, #tpu.memory_space<vmem>>, vector<64x32xf32>
    %c0_7 = arith.constant 0 : index
    %c0_8 = arith.constant 0 : index
    %8 = vector.load %arg5[%c0_7, %c0_8] : memref<1x32xf32, #tpu.memory_space<vmem>>, vector<1x32xf32>
    %cst_9 = arith.constant dense<0.000000e+00> : vector<8x32xf32>
    %9 = tpu.matmul %6, %7, %cst_9 {dimension_numbers = #tpu.dot_dimension_numbers<[1], [0], [0], [1], [0, 0, 1, 1], [], []>} : vector<8x64xf32>, vector<64x32xf32>, vector<8x32xf32> -> vector<8x32xf32>
    %10 = vector.broadcast %8 : vector<1x32xf32> to vector<8x32xf32>
    %11 = arith.addf %9, %10 : vector<8x32xf32>
    %12 = math.tanh %11 : vector<8x32xf32>
    %c0_10 = arith.constant 0 : index
    %c0_11 = arith.constant 0 : index
    %13 = vector.load %arg6[%c0_10, %c0_11] : memref<32x16xf32, #tpu.memory_space<vmem>>, vector<32x16xf32>
    %c0_12 = arith.constant 0 : index
    %c0_13 = arith.constant 0 : index
    %14 = vector.load %arg7[%c0_12, %c0_13] : memref<1x16xf32, #tpu.memory_space<vmem>>, vector<1x16xf32>
    %cst_14 = arith.constant dense<0.000000e+00> : vector<8x16xf32>
    %15 = tpu.matmul %12, %13, %cst_14 {dimension_numbers = #tpu.dot_dimension_numbers<[1], [0], [0], [1], [0, 0, 1, 1], [], []>} : vector<8x32xf32>, vector<32x16xf32>, vector<8x16xf32> -> vector<8x16xf32>
    %16 = vector.broadcast %14 : vector<1x16xf32> to vector<8x16xf32>
    %17 = arith.addf %15, %16 : vector<8x16xf32>
    %18 = math.tanh %17 : vector<8x16xf32>
    %c0_15 = arith.constant 0 : index
    %c0_16 = arith.constant 0 : index
    %19 = vector.load %arg8[%c0_15, %c0_16] : memref<8x16xf32, #tpu.memory_space<vmem>>, vector<8x16xf32>
    tpu.vector_store %arg8[%c0_15, %c0_16], %18 {strides = array<i32>} : memref<8x16xf32, #tpu.memory_space<vmem>>, vector<8x16xf32>,
    return
  }
  func.func @transform_0(%arg0: i32) -> (i32, i32) {
    %c0_i32 = arith.constant 0 : i32
    %c0_i32_0 = arith.constant 0 : i32
    return %arg0, %c0_i32 : i32, i32
  }
  func.func @transform_1(%arg0: i32) -> (i32, i32) {
    %c0_i32 = arith.constant 0 : i32
    %c0_i32_0 = arith.constant 0 : i32
    %c0_i32_1 = arith.constant 0 : i32
    return %c0_i32, %c0_i32_0 : i32, i32
  }
  func.func @transform_2(%arg0: i32) -> (i32, i32) {
    %c0_i32 = arith.constant 0 : i32
    %c0_i32_0 = arith.constant 0 : i32
    %c0_i32_1 = arith.constant 0 : i32
    return %c0_i32, %c0_i32_0 : i32, i32
  }
  func.func @transform_3(%arg0: i32) -> (i32, i32) {
    %c0_i32 = arith.constant 0 : i32
    %c0_i32_0 = arith.constant 0 : i32
    %c0_i32_1 = arith.constant 0 : i32
    return %c0_i32, %c0_i32_0 : i32, i32
  }
  func.func @transform_4(%arg0: i32) -> (i32, i32) {
    %c0_i32 = arith.constant 0 : i32
    %c0_i32_0 = arith.constant 0 : i32
    %c0_i32_1 = arith.constant 0 : i32
    return %c0_i32, %c0_i32_0 : i32, i32
  }
  func.func @transform_5(%arg0: i32) -> (i32, i32) {
    %c0_i32 = arith.constant 0 : i32
    %c0_i32_0 = arith.constant 0 : i32
    %c0_i32_1 = arith.constant 0 : i32
    return %c0_i32, %c0_i32_0 : i32, i32
  }
  func.func @transform_6(%arg0: i32) -> (i32, i32) {
    %c0_i32 = arith.constant 0 : i32
    %c0_i32_0 = arith.constant 0 : i32
    %c0_i32_1 = arith.constant 0 : i32
    return %c0_i32, %c0_i32_0 : i32, i32
  }
  func.func @transform_7(%arg0: i32) -> (i32, i32) {
    %c0_i32 = arith.constant 0 : i32
    %c0_i32_0 = arith.constant 0 : i32
    return %arg0, %c0_i32 : i32, i32
  }
}

</mosaic_0001>

<bundles_post_ra>
// kernel: tpu_custom_call.1
= control target key start
LH: loop header
LB: loop body
LE: loop exit
PB: predicated region body
PF: predicated region fallthrough
CT: control target
= control target key end

     0   :  { %v429_v3 = vmov 0.0|0.0   ;;  %vm430_vm0 = vmmov 0   ;;  %v431_v6 = vmov 0.0   ;;  %s550_s0 = inlined_call_operand.vmem [shape: f32[8,32], index: 0, kind: input, shape index: {}]   ;;  %s551_s1 = inlined_call_operand.vmem [shape: f32[32,64], index: 1, kind: input, shape index: {}]   ;;  %s552_s2 = inlined_call_operand.vmem [shape: f32[1,64], index: 2, kind: input, shape index: {}]   ;;  %s553_s3 = inlined_call_operand.vmem [shape: f32[64,32], index: 3, kind: input, shape index: {}]   ;;  %s554_s4 = inlined_call_operand.vmem [shape: f32[1,32], index: 4, kind: input, shape index: {}]   ;;  %s555_s5 = inlined_call_operand.vmem [shape: f32[32,16], index: 5, kind: input, shape index: {}]   ;;  %s556_s6 = inlined_call_operand.vmem [shape: f32[1,16], index: 6, kind: input, shape index: {}]   ;;  %s557_s7 = inlined_call_operand.hbm [shape: f32[8,16], index: 7, kind: output, shape index: {}]  }
   0x1   :  { %v28_v0 = vld [vmem:[%s551_s1] sm:$0xff]  ;;  %v29_v1 = vld [vmem:[%s551_s1 + $0x8] sm:$0xff]  ;;  %v30_v2 = vld [vmem:[%s551_s1 + $0x10] sm:$0xff]  ;;  %371 = vmatprep.subr.bf16.mxu0 %v429_v3  ;;  %338 = vmatprep.mubr.msk.f32.mxu0 %vm430_vm0, %v431_v6 }
   0x2   :  { %v372_v4 = vpack.c.bf16 %v29_v1, %v28_v0  ;;  %v31_v5 = vld [vmem:[%s551_s1 + $0x18] sm:$0xff]  ;;  %v114_v7 = vld [vmem:[%s553_s3] sm:$0xff]  ;;  %377 = vmatprep.subr.bf16.mxu1 %v429_v3  ;;  %v115_v8 = vld [vmem:[%s553_s3 + $0x8] sm:$0xff]  ;;  %357 = vmatprep.mubr.msk.f32.mxu1 %vm430_vm0, %v431_v6 }
   0x3   :  { %12 = vsyncpa [#allocation3], 0  ;;  %v375_v9 = vpack.c.bf16 %v31_v5, %v30_v2  ;;  %v378_v10 = vpack.c.bf16 %v115_v8, %v114_v7  ;;  %v27_v11 = vld [vmem:[%s550_s0] sm:$0xff]  ;;  %vm39_vm1 = vcmask 261120   ;;  %v116_v12 = vld [vmem:[%s553_s3 + $0x10] sm:$0xff]  ;;  %vm129_vm2 = vcmask 523264  }
   0x4   :  { %373 = vmatpush3.bf16.msra.mxu0 %v372_v4  ;;  %v117_v13 = vld [vmem:[%s553_s3 + $0x18] sm:$0xff]  ;;  %v118_v15 = vld [vmem:[%s553_s3 + $0x20] sm:$0xff]  ;;  %v119_v16 = vld [vmem:[%s553_s3 + $0x28] sm:$0xff]  ;;  %vm289_vm3 = vcmask 130048  }
   0x5   :  { %374 = vmatprep.subr.bf16.mxu0 %v429_v3  ;;  %379 = vmatpush3.bf16.msra.mxu1 %v378_v10  ;;  %v381_v14 = vpack.c.bf16 %v117_v13, %v116_v12  ;;  %v384_v17 = vpack.c.bf16 %v119_v16, %v118_v15  ;;  %v120_v18 = vld [vmem:[%s553_s3 + $0x30] sm:$0xff]  ;;  %v121_v19 = vld [vmem:[%s553_s3 + $0x38] sm:$0xff]  ;;  %v305_v21 = vld [vmem:[%s552_s2] ss:$0 sm:$0xff] }
   0x6   :  { %380 = vmatprep.subr.bf16.mxu1 %v429_v3  ;;  %v387_v20 = vpack.c.bf16 %v121_v19, %v120_v18  ;;  %v204_v26 = vld [vmem:[%s555_s5] sm:$0xff]  ;;  %v205_v27 = vld [vmem:[%s555_s5 + $0x8] sm:$0xff]  ;;  %v206_v28 = vld [vmem:[%s555_s5 + $0x10] sm:$0xff] }
   0x7   :  { %v390_v29 = vpack.c.bf16 %v205_v27, %v204_v26  ;;  %v207_v30 = vld [vmem:[%s555_s5 + $0x18] sm:$0xff]  ;;  %v307_v32 = vld [vmem:[%s554_s4] ss:$0 sm:$0xff]  ;;  %s432_s5 = smov [#allocation2]  }
   0x8   :  { %376 = vmatpush3.bf16.msra.mxu0 %v375_v9  ;;  %v393_v31 = vpack.c.bf16 %v207_v30, %v206_v28  ;;  %v309_v37 = vld [vmem:[%s556_s6] ss:$0 sm:$0xff]  ;;  %s297_s13 = sshll.u32 %s432_s5, 4  ;;  %s298_s13 = int_to_ptr.vmem [resolvable:$true] %s297_s13 }
   0x9   :  { %389 = vmatprep.subr.bf16.mxu0 %v429_v3  ;;  %382 = vmatpush3.bf16.msra.mxu1 %v381_v14  ;;  %s405_s4 = scalar_lea.vmem %s298_s13, 128  ;;  %p410_p1 = scmp.lt.s32.totalorder %s298_s13, %s298_s13 }
   0xa   :  { %383 = vmatprep.subr.bf16.mxu1 %v429_v3  ;;  %p406_p0 = scmp.ne.s32.totalorder %s298_s13, %s405_s4  ;;  %p411_p2 = scmp.lt.s32.totalorder %s405_s4, %s405_s4 }
   0xb   :  { %339 = vmatmul.mubr.msk.f32.vlgmr.msra.gmra.mrb[0].mxu0 %vm39_vm1, %v27_v11 }
   0xc   :  { %368 = vmatprep.mubr.msk.f32.mxu0 %vm430_vm0, %v431_v6  ;;  %391 = vmatpush3.bf16.msra.mxu0 %v390_v29  ;;  %p412_p3 = por %p411_p2, %p410_p1 }
   0xd   :  { %385 = vmatpush3.bf16.msra.mxu1 %v384_v17  ;;  %392 = vmatprep.subr.bf16.mxu0 %v429_v3 }
   0xe   :  { %386 = vmatprep.subr.bf16.mxu1 %v429_v3  ;;  %p413_p4 = pnand %p412_p3, %p406_p0 }
  0x10   :  { %394 = vmatpush3.bf16.msra.mxu0 %v393_v31 }
  0x11   :  { %388 = vmatpush3.bf16.msra.mxu1 %v387_v20 }
  0xde   :  { %v109_v22 = vpop.f32.mrb[0].mxu0 }
  0xdf   :  { %v110_v23 = vadd.f32 %v305_v21, %v109_v22  ;;  %v340_v24 = vpop.f32.mrb[1].mxu0 }
  0xe1   :  { %399 = vtanh.f32 %v110_v23 }
  0xeb   :  { %v400_v25 = vpop.eup %399 }
  0xec   :  { %358 = vmatmul.mubr.msk.f32.vlgmr.msra.gmra.mrb[0].mxu1 %vm129_vm2, %v400_v25 }
 0x1bf   :  { %v199_v33 = vpop.f32.mrb[0].mxu1 }
 0x1c0   :  { %v200_v34 = vadd.f32 %v307_v32, %v199_v33  ;;  %v359_v35 = vpop.f32.mrb[1].mxu1 }
 0x1c2   :  { %401 = vtanh.f32 %v200_v34 }
 0x1cc   :  { %v402_v36 = vpop.eup %401 }
 0x1cd   :  { %369 = vmatmul.mubr.msk.f32.vlgmr.msra.gmra.mrb[2].mxu0 %vm39_vm1, %v402_v36 }
 0x2a0   :  { %v284_v38 = vpop.f32.mrb[2].mxu0 }
 0x2a1   :  { %v285_v39 = vadd.f32 %v309_v37, %v284_v38  ;;  %v370_v40 = vpop.f32.mrb[3].mxu0 }
 0x2a3   :  { %403 = vtanh.f32 %v285_v39 }
 0x2ad   :  { %v404_v41 = vpop.eup %403 }
 0x2ae   :  { %290 = vst.msk [vmem:[#allocation2] sm:$0xff] %vm289_vm3, %v404_v41 }
 0x2af   :  { %416 = shalt.err (!%p413_p4)
}
 0x2b0   :  { %s417_s6 = scalar_lea.hbm %s557_s7, 128 }
 0x2b1   :  { %p418_p5 = scmp.ne.s32.totalorder %s557_s7, %s417_s6  ;;  %p421_p6 = scmp.lt.u32.totalorder %s417_s6, %s557_s7 }
 0x2b3   :  { %p423_p7 = pnand %p421_p6, %p418_p5 }
 0x2b5   :  { %426 = shalt.err (!%p423_p7)
}
 0x2b6   :  { %300 = dma.vmem_to_hbm [thread:$0]  %s298_s13, 128, %s557_s7, [#allocation3]  }
 0x2b7   :  { %427 = dma.done.wait [#allocation3], 128  }
 0x2b8   :  { %428 = vsyncadd [#allocation3], 4294967168 }
 0x2b9   :  { %304 = vsyncpa [#allocation3], 1 }

</bundles_post_ra>
